<compile_context>
chip_gen: v7x
topology: tpu7x:2x2x1
jax: 0.10.0
libtpu: 0.0.40
codegen_flags: <defaults>
</compile_context>

<pallas_src>
import math

import jax
import jax.numpy as jnp
from jax.experimental import pallas as pl
from jax.experimental.pallas import tpu as pltpu

HIDDEN = 128


# ----------------------------- Pallas kernel ---------------------------------
def q_forward_kernel(
    x_ref,
    w1_ref, b1_ref,
    w2mu_ref, w2sig_ref, e2in_ref, e2out_ref, b2mu_ref, b2sig_ref,
    w3mu_ref, w3sig_ref, e3in_ref, e3out_ref, b3mu_ref, b3sig_ref,
    out_ref,
):
    f32 = jnp.float32
    x = x_ref[...]

    # fc1 + relu  (w1 stored bf16; upcast in VMEM, accumulate f32 on MXU)
    h = jnp.dot(x, w1_ref[...].astype(f32), preferred_element_type=f32) + b1_ref[...]
    h = jnp.maximum(h, 0.0)

    # noise1 (NoisyLinear, training mode). Rank-1 eps formed in-kernel; all
    # elementwise math in f32 (v5e has no bf16 VPU path).
    e2 = e2in_ref[...] * e2out_ref[...]                         # (128,1)*(1,128) -> (128,128)
    w2 = w2mu_ref[...].astype(f32) + w2sig_ref[...].astype(f32) * e2
    b2 = b2mu_ref[...] + b2sig_ref[...] * e2out_ref[...]
    h = jnp.dot(h, w2, preferred_element_type=f32) + b2
    h = jnp.maximum(h, 0.0)

    # output (NoisyLinear, training mode), zero-padded to 128 lanes.
    e3 = e3in_ref[...] * e3out_ref[...]
    w3 = w3mu_ref[...].astype(f32) + w3sig_ref[...].astype(f32) * e3
    b3 = b3mu_ref[...] + b3sig_ref[...] * e3out_ref[...]
    out_ref[...] = jnp.dot(h, w3, preferred_element_type=f32) + b3


# ------------------------------- wrapper --------------------------------------
def _round_up(n, m):
    return ((n + m - 1) // m) * m


def q_forward(x, params, *, block_b=None):
    """Fused Q-network forward pass on TPU via Pallas. Returns (B, action_dim) f32."""
    B, S = x.shape
    A = params["action_dim"]
    H = HIDDEN

    # Batch tile: multiple of 8 sublanes, capped at 1024 rows (v7x VMEM-safe).
    if block_b is None:
        block_b = min(1024, _round_up(B, 8))
    Bp = _round_up(B, block_b)
    if Bp != B:
        x = jnp.pad(x, ((0, Bp - B), (0, 0)))

    grid = (Bp // block_b,)

    def batch_map(i):
        return (i, 0)

    def const_map(i):          # same block every step -> weights stay VMEM-resident
        return (0, 0)

    args = (
        x,
        params["w1"], params["b1"],
        params["w2_mu"], params["w2_sigma"], params["eps2_in"], params["eps2_out"],
        params["b2_mu"], params["b2_sigma"],
        params["w3_mu"], params["w3_sigma"], params["eps3_in"], params["eps3_out"],
        params["b3_mu"], params["b3_sigma"],
    )

    in_specs = [pl.BlockSpec((block_b, S), batch_map)]
    in_specs += [pl.BlockSpec(a.shape, const_map) for a in args[1:]]

    out = pl.pallas_call(
        q_forward_kernel,
        out_shape=jax.ShapeDtypeStruct((Bp, H), jnp.float32),
        grid=grid,
        in_specs=in_specs,
        out_specs=pl.BlockSpec((block_b, H), batch_map),
        compiler_params=pltpu.CompilerParams(
            dimension_semantics=("parallel",),   # batch tiles are independent (megacore)
        ),
    )(*args)

    # TODO(synk): for RL rollouts with fixed weights, a cross-call weight prefetch (P10)
    # would remove the remaining per-call weight DMA entirely.
    return out[:B, :A]


# --------------------------- parameter construction --------------------------
def _orthogonal(key, shape, gain):
    """Deterministic orthogonal init (mirrors nn.init.orthogonal_ semantics)."""
    rows, cols = shape
    n = max(rows, cols)
    a = jax.random.normal(key, (n, min(rows, cols)), dtype=jnp.float32)
    q, r = jnp.linalg.qr(a)
    q = q * jnp.sign(jnp.diag(r))
    q = q[:n, : min(rows, cols)]
    if rows < cols:
        q = q.T
    return gain * q[:rows, :cols]


def _scale_noise(key, size):
    x = jax.random.normal(key, (size,), dtype=jnp.float32)
    return jnp.sign(x) * jnp.sqrt(jnp.abs(x))


def init_q_params(key, state_dim, action_dim, std_init=0.4):
    H = HIDDEN
    ks = jax.random.split(key, 10)

    # fc1: Linear(state_dim, 128), orthogonal(gain=sqrt(2)), bias=0.
    # torch weight is (128, state_dim); we store its transpose (state_dim, 128) as bf16.
    w1 = _orthogonal(ks[0], (H, state_dim), gain=math.sqrt(2.0)).T.astype(jnp.bfloat16)
    b1 = jnp.zeros((1, H), dtype=jnp.float32)

    def noisy_layer(k_mu_w, k_mu_b, k_eps_in, k_eps_out, in_f, out_f, pad_out):
        std = math.sqrt(3.0 / in_f)
        w_mu = jax.random.uniform(k_mu_w, (in_f, out_f), jnp.float32, -std, std)
        w_sigma = jnp.full((in_f, out_f), std_init / math.sqrt(in_f), jnp.float32)
        b_mu = jax.random.uniform(k_mu_b, (1, out_f), jnp.float32, -std, std)
        b_sigma = jnp.full((1, out_f), std_init / math.sqrt(out_f), jnp.float32)
        eps_in = _scale_noise(k_eps_in, in_f).reshape(in_f, 1)     # column factor
        eps_out = _scale_noise(k_eps_out, out_f).reshape(1, out_f)  # row factor (= bias eps)
        if pad_out > out_f:  # zero-pad output columns -> padded lanes compute exactly 0
            pad = ((0, 0), (0, pad_out - out_f))
            w_mu, w_sigma = jnp.pad(w_mu, pad), jnp.pad(w_sigma, pad)
            b_mu, b_sigma = jnp.pad(b_mu, pad), jnp.pad(b_sigma, pad)
            eps_out = jnp.pad(eps_out, pad)
        return (w_mu.astype(jnp.bfloat16), w_sigma.astype(jnp.bfloat16),
                eps_in, eps_out, b_mu, b_sigma)

    w2_mu, w2_sigma, eps2_in, eps2_out, b2_mu, b2_sigma = noisy_layer(
        ks[1], ks[2], ks[3], ks[4], H, H, pad_out=H
    )
    w3_mu, w3_sigma, eps3_in, eps3_out, b3_mu, b3_sigma = noisy_layer(
        ks[5], ks[6], ks[7], ks[8], H, action_dim, pad_out=H
    )

    return dict(
        action_dim=action_dim,
        w1=w1, b1=b1,
        w2_mu=w2_mu, w2_sigma=w2_sigma, eps2_in=eps2_in, eps2_out=eps2_out,
        b2_mu=b2_mu, b2_sigma=b2_sigma,
        w3_mu=w3_mu, w3_sigma=w3_sigma, eps3_in=eps3_in, eps3_out=eps3_out,
        b3_mu=b3_mu, b3_sigma=b3_sigma,
    )


# ------------------------------- reference -----------------------------------
def q_forward_ref(x, p):
    f32 = jnp.float32
    h = jnp.maximum(x @ p["w1"].astype(f32) + p["b1"], 0.0)
    w2 = p["w2_mu"].astype(f32) + p["w2_sigma"].astype(f32) * (p["eps2_in"] * p["eps2_out"])
    b2 = p["b2_mu"] + p["b2_sigma"] * p["eps2_out"]
    h = jnp.maximum(h @ w2 + b2, 0.0)
    w3 = p["w3_mu"].astype(f32) + p["w3_sigma"].astype(f32) * (p["eps3_in"] * p["eps3_out"])
    b3 = p["b3_mu"] + p["b3_sigma"] * p["eps3_out"]
    q = h @ w3 + b3
    return q[:, : p["action_dim"]]


# --------------------------------- main ---------------------------------------
if __name__ == "__main__":
    key = jax.random.PRNGKey(0)
    k_param, k_state = jax.random.split(key)

    STATE_DIM = 8     # LunarLander observation dim
    ACTION_DIM = 4    # LunarLander discrete actions
    BATCH = 8

    params = init_q_params(k_param, STATE_DIM, ACTION_DIM)
    state = jax.random.normal(k_state, (BATCH, STATE_DIM), dtype=jnp.float32)

    q = q_forward(state, params)
    q = jax.block_until_ready(q)

    q_ref = q_forward_ref(state, params)
    assert q.shape == (BATCH, ACTION_DIM)
    assert jnp.allclose(q, q_ref, atol=2e-4, rtol=2e-4), "mismatch vs. pure-JAX reference"

    print("KERNEL_OK")
</pallas_src>

<mosaic_0001>
module attributes {stable_mosaic.version = 11 : i64} {
  func.func @q_forward_kernel(%arg0: i32, %arg1: memref<8x8xf32, #tpu.memory_space<vmem>>, %arg2: memref<8x128xbf16, #tpu.memory_space<vmem>>, %arg3: memref<1x128xf32, #tpu.memory_space<vmem>>, %arg4: memref<128x128xbf16, #tpu.memory_space<vmem>>, %arg5: memref<128x128xbf16, #tpu.memory_space<vmem>>, %arg6: memref<128x1xf32, #tpu.memory_space<vmem>>, %arg7: memref<1x128xf32, #tpu.memory_space<vmem>>, %arg8: memref<1x128xf32, #tpu.memory_space<vmem>>, %arg9: memref<1x128xf32, #tpu.memory_space<vmem>>, %arg10: memref<128x128xbf16, #tpu.memory_space<vmem>>, %arg11: memref<128x128xbf16, #tpu.memory_space<vmem>>, %arg12: memref<128x1xf32, #tpu.memory_space<vmem>>, %arg13: memref<1x128xf32, #tpu.memory_space<vmem>>, %arg14: memref<1x128xf32, #tpu.memory_space<vmem>>, %arg15: memref<1x128xf32, #tpu.memory_space<vmem>>, %arg16: memref<8x128xf32, #tpu.memory_space<vmem>>) attributes {dimension_semantics = [#tpu.dimension_semantics<parallel>], iteration_bounds = array<i64: 1>, scalar_prefetch = 0 : i64, scratch_operands = 0 : i64, tpu.core_type = #tpu.core_type<tc>, window_params = [{transform_indices = @transform_0, window_bounds = array<i64: 8, 8>}, {pipeline_mode = #tpu.pipeline_mode<synchronous>, transform_indices = @transform_1, window_bounds = array<i64: 8, 128>}, {pipeline_mode = #tpu.pipeline_mode<synchronous>, transform_indices = @transform_2, window_bounds = array<i64: 1, 128>}, {pipeline_mode = #tpu.pipeline_mode<synchronous>, transform_indices = @transform_3, window_bounds = array<i64: 128, 128>}, {pipeline_mode = #tpu.pipeline_mode<synchronous>, transform_indices = @transform_4, window_bounds = array<i64: 128, 128>}, {pipeline_mode = #tpu.pipeline_mode<synchronous>, transform_indices = @transform_5, window_bounds = array<i64: 128, 1>}, {pipeline_mode = #tpu.pipeline_mode<synchronous>, transform_indices = @transform_6, window_bounds = array<i64: 1, 128>}, {pipeline_mode = #tpu.pipeline_mode<synchronous>, transform_indices = @transform_7, window_bounds = array<i64: 1, 128>}, {pipeline_mode = #tpu.pipeline_mode<synchronous>, transform_indices = @transform_8, window_bounds = array<i64: 1, 128>}, {pipeline_mode = #tpu.pipeline_mode<synchronous>, transform_indices = @transform_9, window_bounds = array<i64: 128, 128>}, {pipeline_mode = #tpu.pipeline_mode<synchronous>, transform_indices = @transform_10, window_bounds = array<i64: 128, 128>}, {pipeline_mode = #tpu.pipeline_mode<synchronous>, transform_indices = @transform_11, window_bounds = array<i64: 128, 1>}, {pipeline_mode = #tpu.pipeline_mode<synchronous>, transform_indices = @transform_12, window_bounds = array<i64: 1, 128>}, {pipeline_mode = #tpu.pipeline_mode<synchronous>, transform_indices = @transform_13, window_bounds = array<i64: 1, 128>}, {pipeline_mode = #tpu.pipeline_mode<synchronous>, transform_indices = @transform_14, window_bounds = array<i64: 1, 128>}, {transform_indices = @transform_15, window_bounds = array<i64: 8, 128>}]} {
    %c0 = arith.constant 0 : index
    %c0_0 = arith.constant 0 : index
    %0 = vector.load %arg1[%c0, %c0_0] : memref<8x8xf32, #tpu.memory_space<vmem>>, vector<8x8xf32>
    %c0_1 = arith.constant 0 : index
    %c0_2 = arith.constant 0 : index
    %1 = vector.load %arg2[%c0_1, %c0_2] : memref<8x128xbf16, #tpu.memory_space<vmem>>, vector<8x128xbf16>
    %2 = arith.extf %1 : vector<8x128xbf16> to vector<8x128xf32>
    %cst = arith.constant dense<0.000000e+00> : vector<8x128xf32>
    %3 = tpu.matmul %0, %2, %cst {dimension_numbers = #tpu.dot_dimension_numbers<[1], [0], [0], [1], [0, 0, 1, 1], [], []>} : vector<8x8xf32>, vector<8x128xf32>, vector<8x128xf32> -> vector<8x128xf32>
    %c0_3 = arith.constant 0 : index
    %c0_4 = arith.constant 0 : index
    %4 = vector.load %arg3[%c0_3, %c0_4] : memref<1x128xf32, #tpu.memory_space<vmem>>, vector<1x128xf32>
    %5 = vector.broadcast %4 : vector<1x128xf32> to vector<8x128xf32>
    %6 = arith.addf %3, %5 : vector<8x128xf32>
    %cst_5 = arith.constant 0.000000e+00 : f32
    %7 = vector.broadcast %cst_5 : f32 to vector<8x128xf32>
    %8 = arith.maximumf %6, %7 : vector<8x128xf32>
    %c0_6 = arith.constant 0 : index
    %c0_7 = arith.constant 0 : index
    %9 = vector.load %arg6[%c0_6, %c0_7] : memref<128x1xf32, #tpu.memory_space<vmem>>, vector<128x1xf32>
    %c0_8 = arith.constant 0 : index
    %c0_9 = arith.constant 0 : index
    %10 = vector.load %arg7[%c0_8, %c0_9] : memref<1x128xf32, #tpu.memory_space<vmem>>, vector<1x128xf32>
    %11 = vector.broadcast %9 : vector<128x1xf32> to vector<128x128xf32>
    %12 = vector.broadcast %10 : vector<1x128xf32> to vector<128x128xf32>
    %13 = arith.mulf %11, %12 : vector<128x128xf32>
    %c0_10 = arith.constant 0 : index
    %c0_11 = arith.constant 0 : index
    %14 = vector.load %arg4[%c0_10, %c0_11] : memref<128x128xbf16, #tpu.memory_space<vmem>>, vector<128x128xbf16>
    %15 = arith.extf %14 : vector<128x128xbf16> to vector<128x128xf32>
    %c0_12 = arith.constant 0 : index
    %c0_13 = arith.constant 0 : index
    %16 = vector.load %arg5[%c0_12, %c0_13] : memref<128x128xbf16, #tpu.memory_space<vmem>>, vector<128x128xbf16>
    %17 = arith.extf %16 : vector<128x128xbf16> to vector<128x128xf32>
    %18 = arith.mulf %17, %13 : vector<128x128xf32>
    %19 = arith.addf %15, %18 : vector<128x128xf32>
    %c0_14 = arith.constant 0 : index
    %c0_15 = arith.constant 0 : index
    %20 = vector.load %arg8[%c0_14, %c0_15] : memref<1x128xf32, #tpu.memory_space<vmem>>, vector<1x128xf32>
    %c0_16 = arith.constant 0 : index
    %c0_17 = arith.constant 0 : index
    %21 = vector.load %arg9[%c0_16, %c0_17] : memref<1x128xf32, #tpu.memory_space<vmem>>, vector<1x128xf32>
    %c0_18 = arith.constant 0 : index
    %c0_19 = arith.constant 0 : index
    %22 = vector.load %arg7[%c0_18, %c0_19] : memref<1x128xf32, #tpu.memory_space<vmem>>, vector<1x128xf32>
    %23 = arith.mulf %21, %22 : vector<1x128xf32>
    %24 = arith.addf %20, %23 : vector<1x128xf32>
    %cst_20 = arith.constant dense<0.000000e+00> : vector<8x128xf32>
    %25 = tpu.matmul %8, %19, %cst_20 {dimension_numbers = #tpu.dot_dimension_numbers<[1], [0], [0], [1], [0, 0, 1, 1], [], []>} : vector<8x128xf32>, vector<128x128xf32>, vector<8x128xf32> -> vector<8x128xf32>
    %26 = vector.broadcast %24 : vector<1x128xf32> to vector<8x128xf32>
    %27 = arith.addf %25, %26 : vector<8x128xf32>
    %cst_21 = arith.constant 0.000000e+00 : f32
    %28 = vector.broadcast %cst_21 : f32 to vector<8x128xf32>
    %29 = arith.maximumf %27, %28 : vector<8x128xf32>
    %c0_22 = arith.constant 0 : index
    %c0_23 = arith.constant 0 : index
    %30 = vector.load %arg12[%c0_22, %c0_23] : memref<128x1xf32, #tpu.memory_space<vmem>>, vector<128x1xf32>
    %c0_24 = arith.constant 0 : index
    %c0_25 = arith.constant 0 : index
    %31 = vector.load %arg13[%c0_24, %c0_25] : memref<1x128xf32, #tpu.memory_space<vmem>>, vector<1x128xf32>
    %32 = vector.broadcast %30 : vector<128x1xf32> to vector<128x128xf32>
    %33 = vector.broadcast %31 : vector<1x128xf32> to vector<128x128xf32>
    %34 = arith.mulf %32, %33 : vector<128x128xf32>
    %c0_26 = arith.constant 0 : index
    %c0_27 = arith.constant 0 : index
    %35 = vector.load %arg10[%c0_26, %c0_27] : memref<128x128xbf16, #tpu.memory_space<vmem>>, vector<128x128xbf16>
    %36 = arith.extf %35 : vector<128x128xbf16> to vector<128x128xf32>
    %c0_28 = arith.constant 0 : index
    %c0_29 = arith.constant 0 : index
    %37 = vector.load %arg11[%c0_28, %c0_29] : memref<128x128xbf16, #tpu.memory_space<vmem>>, vector<128x128xbf16>
    %38 = arith.extf %37 : vector<128x128xbf16> to vector<128x128xf32>
    %39 = arith.mulf %38, %34 : vector<128x128xf32>
    %40 = arith.addf %36, %39 : vector<128x128xf32>
    %c0_30 = arith.constant 0 : index
    %c0_31 = arith.constant 0 : index
    %41 = vector.load %arg14[%c0_30, %c0_31] : memref<1x128xf32, #tpu.memory_space<vmem>>, vector<1x128xf32>
    %c0_32 = arith.constant 0 : index
    %c0_33 = arith.constant 0 : index
    %42 = vector.load %arg15[%c0_32, %c0_33] : memref<1x128xf32, #tpu.memory_space<vmem>>, vector<1x128xf32>
    %c0_34 = arith.constant 0 : index
    %c0_35 = arith.constant 0 : index
    %43 = vector.load %arg13[%c0_34, %c0_35] : memref<1x128xf32, #tpu.memory_space<vmem>>, vector<1x128xf32>
    %44 = arith.mulf %42, %43 : vector<1x128xf32>
    %45 = arith.addf %41, %44 : vector<1x128xf32>
    %cst_36 = arith.constant dense<0.000000e+00> : vector<8x128xf32>
    %46 = tpu.matmul %29, %40, %cst_36 {dimension_numbers = #tpu.dot_dimension_numbers<[1], [0], [0], [1], [0, 0, 1, 1], [], []>} : vector<8x128xf32>, vector<128x128xf32>, vector<8x128xf32> -> vector<8x128xf32>
    %47 = vector.broadcast %45 : vector<1x128xf32> to vector<8x128xf32>
    %48 = arith.addf %46, %47 : vector<8x128xf32>
    %c0_37 = arith.constant 0 : index
    %c0_38 = arith.constant 0 : index
    %49 = vector.load %arg16[%c0_37, %c0_38] : memref<8x128xf32, #tpu.memory_space<vmem>>, vector<8x128xf32>
    tpu.vector_store %arg16[%c0_37, %c0_38], %48 {strides = array<i32>} : memref<8x128xf32, #tpu.memory_space<vmem>>, vector<8x128xf32>,
    return
  }
  func.func @transform_0(%arg0: i32) -> (i32, i32) {
    %c0_i32 = arith.constant 0 : i32
    %c0_i32_0 = arith.constant 0 : i32
    return %arg0, %c0_i32 : i32, i32
  }
  func.func @transform_1(%arg0: i32) -> (i32, i32) {
    %c0_i32 = arith.constant 0 : i32
    %c0_i32_0 = arith.constant 0 : i32
    %c0_i32_1 = arith.constant 0 : i32
    return %c0_i32, %c0_i32_0 : i32, i32
  }
  func.func @transform_2(%arg0: i32) -> (i32, i32) {
    %c0_i32 = arith.constant 0 : i32
    %c0_i32_0 = arith.constant 0 : i32
    %c0_i32_1 = arith.constant 0 : i32
    return %c0_i32, %c0_i32_0 : i32, i32
  }
  func.func @transform_3(%arg0: i32) -> (i32, i32) {
    %c0_i32 = arith.constant 0 : i32
    %c0_i32_0 = arith.constant 0 : i32
    %c0_i32_1 = arith.constant 0 : i32
    return %c0_i32, %c0_i32_0 : i32, i32
  }
  func.func @transform_4(%arg0: i32) -> (i32, i32) {
    %c0_i32 = arith.constant 0 : i32
    %c0_i32_0 = arith.constant 0 : i32
    %c0_i32_1 = arith.constant 0 : i32
    return %c0_i32, %c0_i32_0 : i32, i32
  }
  func.func @transform_5(%arg0: i32) -> (i32, i32) {
    %c0_i32 = arith.constant 0 : i32
    %c0_i32_0 = arith.constant 0 : i32
    %c0_i32_1 = arith.constant 0 : i32
    return %c0_i32, %c0_i32_0 : i32, i32
  }
  func.func @transform_6(%arg0: i32) -> (i32, i32) {
    %c0_i32 = arith.constant 0 : i32
    %c0_i32_0 = arith.constant 0 : i32
    %c0_i32_1 = arith.constant 0 : i32
    return %c0_i32, %c0_i32_0 : i32, i32
  }
  func.func @transform_7(%arg0: i32) -> (i32, i32) {
    %c0_i32 = arith.constant 0 : i32
    %c0_i32_0 = arith.constant 0 : i32
    %c0_i32_1 = arith.constant 0 : i32
    return %c0_i32, %c0_i32_0 : i32, i32
  }
  func.func @transform_8(%arg0: i32) -> (i32, i32) {
    %c0_i32 = arith.constant 0 : i32
    %c0_i32_0 = arith.constant 0 : i32
    %c0_i32_1 = arith.constant 0 : i32
    return %c0_i32, %c0_i32_0 : i32, i32
  }
  func.func @transform_9(%arg0: i32) -> (i32, i32) {
    %c0_i32 = arith.constant 0 : i32
    %c0_i32_0 = arith.constant 0 : i32
    %c0_i32_1 = arith.constant 0 : i32
    return %c0_i32, %c0_i32_0 : i32, i32
  }
  func.func @transform_10(%arg0: i32) -> (i32, i32) {
    %c0_i32 = arith.constant 0 : i32
    %c0_i32_0 = arith.constant 0 : i32
    %c0_i32_1 = arith.constant 0 : i32
    return %c0_i32, %c0_i32_0 : i32, i32
  }
  func.func @transform_11(%arg0: i32) -> (i32, i32) {
    %c0_i32 = arith.constant 0 : i32
    %c0_i32_0 = arith.constant 0 : i32
    %c0_i32_1 = arith.constant 0 : i32
    return %c0_i32, %c0_i32_0 : i32, i32
  }
  func.func @transform_12(%arg0: i32) -> (i32, i32) {
    %c0_i32 = arith.constant 0 : i32
    %c0_i32_0 = arith.constant 0 : i32
    %c0_i32_1 = arith.constant 0 : i32
    return %c0_i32, %c0_i32_0 : i32, i32
  }
  func.func @transform_13(%arg0: i32) -> (i32, i32) {
    %c0_i32 = arith.constant 0 : i32
    %c0_i32_0 = arith.constant 0 : i32
    %c0_i32_1 = arith.constant 0 : i32
    return %c0_i32, %c0_i32_0 : i32, i32
  }
  func.func @transform_14(%arg0: i32) -> (i32, i32) {
    %c0_i32 = arith.constant 0 : i32
    %c0_i32_0 = arith.constant 0 : i32
    %c0_i32_1 = arith.constant 0 : i32
    return %c0_i32, %c0_i32_0 : i32, i32
  }
  func.func @transform_15(%arg0: i32) -> (i32, i32) {
    %c0_i32 = arith.constant 0 : i32
    %c0_i32_0 = arith.constant 0 : i32
    return %arg0, %c0_i32 : i32, i32
  }
}

</mosaic_0001>

<bundles_post_ra>
// kernel: tpu_custom_call.1
= control target key start
LH: loop header
LB: loop body
LE: loop exit
PB: predicated region body
PF: predicated region fallthrough
CT: control target
= control target key end

     0   :  { %20 = vsyncpa [#allocation3], 0  ;;  %s1523_s0 = inlined_call_operand.hbm [shape: f32[8,8], index: 0, kind: input, shape index: {}]   ;;  %s1524_s1 = inlined_call_operand.vmem [shape: bf16[8,128], index: 1, kind: input, shape index: {}]   ;;  %s1525_s2 = inlined_call_operand.vmem [shape: f32[1,128], index: 2, kind: input, shape index: {}]   ;;  %s1526_s3 = inlined_call_operand.vmem [shape: bf16[128,128], index: 3, kind: input, shape index: {}]   ;;  %s1527_s4 = inlined_call_operand.vmem [shape: bf16[128,128], index: 4, kind: input, shape index: {}]   ;;  %s1528_s5 = inlined_call_operand.vmem [shape: f32[128,1], index: 5, kind: input, shape index: {}]   ;;  %s1529_s6 = inlined_call_operand.vmem [shape: f32[1,128], index: 6, kind: input, shape index: {}]   ;;  %s1530_s7 = inlined_call_operand.vmem [shape: f32[1,128], index: 7, kind: input, shape index: {}]   ;;  %s1531_s8 = inlined_call_operand.vmem [shape: f32[1,128], index: 8, kind: input, shape index: {}]   ;;  %s1532_s9 = inlined_call_operand.vmem [shape: bf16[128,128], index: 9, kind: input, shape index: {}]   ;;  %s1533_s10 = inlined_call_operand.vmem [shape: bf16[128,128], index: 10, kind: input, shape index: {}]   ;;  %s1534_s11 = inlined_call_operand.vmem [shape: f32[128,1], index: 11, kind: input, shape index: {}]   ;;  %s1535_s12 = inlined_call_operand.vmem [shape: f32[1,128], index: 12, kind: input, shape index: {}]   ;;  %s1536_s13 = inlined_call_operand.vmem [shape: f32[1,128], index: 13, kind: input, shape index: {}]   ;;  %s1537_s14 = inlined_call_operand.vmem [shape: f32[1,128], index: 14, kind: input, shape index: {}]   ;;  %s1538_s15 = inlined_call_operand.hbm [shape: f32[8,128], index: 15, kind: output, shape index: {}]  }
   0x1   :  { %21 = vsyncpa [#allocation4], 0  ;;  %s1128_s18 = smov [#allocation2]   ;;  %s1080_s22 = scalar_lea.hbm %s1523_s0, 128 }
   0x2   :  { %s28_s19 = sshll.u32 %s1128_s18, 4  ;;  %p1081_p0 = scmp.ne.s32.totalorder %s1523_s0, %s1080_s22  ;;  %s29_s19 = int_to_ptr.vmem [resolvable:$true] %s28_s19 }
   0x3   :  { %p1084_p1 = scmp.lt.u32.totalorder %s1080_s22, %s1523_s0 }
   0x5   :  { %p1086_p2 = pnand %p1084_p1, %p1081_p0 }
   0x7   :  { %1089 = shalt.err (!%p1086_p2)
}
   0x8   :  { %s1090_s27 = scalar_lea.vmem %s29_s19, 128  ;;  %p1095_p4 = scmp.lt.s32.totalorder %s29_s19, %s29_s19 }
   0x9   :  { %p1091_p3 = scmp.ne.s32.totalorder %s29_s19, %s1090_s27  ;;  %p1096_p5 = scmp.lt.s32.totalorder %s1090_s27, %s1090_s27 }
   0xb   :  { %p1097_p6 = por %p1096_p5, %p1095_p4 }
   0xd   :  { %p1098_p7 = pnand %p1097_p6, %p1091_p3 }
   0xf   :  { %1101 = shalt.err (!%p1098_p7)
}
  0x10   :  { %31 = dma.hbm_to_vmem [thread:$0]  %s1523_s0, 128, %s29_s19, [#allocation3]  }
  0x11   :  { %1124 = dma.done.wait [#allocation3], 128  }
  0x12   :  { %1125 = vsyncadd [#allocation3], 4294967168  ;;  %v1129_v0 = vmov 0   ;;  %v1130_v1 = vmov 0.0   ;;  %vm1131_vm0 = vmmov 0   ;;  %v150_v2 = vld [vmem:[%s1528_s5 + $0x10] sm:$0xff]  ;;  %v246_v38 = vlaneseq }
  0x13   :  { %1079 = vset.pattern.permute.xlu1 %v1129_v0  ;;  %1078 = vset.pattern.permute.xlu0 %v1129_v0  ;;  %v148_v3 = vld [vmem:[%s1528_s5] sm:$0xff]  ;;  %vm73_vm1 = vcmask 64512   ;;  %v151_v7 = vld [vmem:[%s1528_s5 + $0x18] sm:$0xff]  ;;  %v149_v8 = vld [vmem:[%s1528_s5 + $0x8] sm:$0xff]  ;;  %v1132_v21 = vmov 0.0|0.0  }
  0x14   :  { %949 = vmatprep.subr.mxu0 %v1130_v1  ;;  %951 = vmatprep.mubr.msk.f32.mxu0 %vm1131_vm0, %v1130_v1  ;;  %v64_v4 = vld [vmem:[%s1524_s1] sm:$0xf]  ;;  %v153_v9 = vld [vmem:[%s1528_s5 + $0x28] sm:$0xff]  ;;  %v155_v11 = vld [vmem:[%s1528_s5 + $0x38] sm:$0xff]  ;;  %v247_v39 = vshrl.u32 %v246_v38, 7 }
  0x15   :  { %986 = vmatprep.mubr.msk.f32.mxu1 %vm1131_vm0, %v1130_v1  ;;  %177 = vperm.xlu1 %1079, %v150_v2   ;;  %v65_v5 = vunpack.c.l.bf16 %v64_v4  ;;  %v63_v6 = vld [vmem:[#allocation2] sm:$0xff]  ;;  %v154_v12 = vld [vmem:[%s1528_s5 + $0x30] sm:$0xff]  ;;  %v157_v13 = vld [vmem:[%s1528_s5 + $0x48] sm:$0xff] }
  0x16   :  { %167 = vperm.xlu0 %1078, %v148_v3   ;;  %v152_v10 = vld [vmem:[%s1528_s5 + $0x20] sm:$0xff]  ;;  %v159_v15 = vld [vmem:[%s1528_s5 + $0x58] sm:$0xff]  ;;  %v158_v16 = vld [vmem:[%s1528_s5 + $0x50] sm:$0xff]  ;;  %1024 = vmatprep.subr.bf16.mxu1 %v1132_v21  ;;  %v1330_v40 = vsub.s32 0, %v247_v39 }
  0x17   :  { %950 = vmatpush3.msra.mxu0 %v65_v5  ;;  %v156_v14 = vld [vmem:[%s1528_s5 + $0x40] sm:$0xff]  ;;  %v161_v17 = vld [vmem:[%s1528_s5 + $0x68] sm:$0xff]  ;;  %v163_v19 = vld [vmem:[%s1528_s5 + $0x78] sm:$0xff] }
  0x18   :  { %952 = vmatmul.mubr.msk.f32.vlgmr.msra.gmra.mrb[0].mxu0 %vm73_vm1, %v63_v6  ;;  %v160_v18 = vld [vmem:[%s1528_s5 + $0x60] sm:$0xff]  ;;  %v162_v20 = vld [vmem:[%s1528_s5 + $0x70] sm:$0xff]  ;;  %1048 = vmatprep.subr.bf16.mxu0 %v1132_v21  ;;  %v445_v22 = vld [vmem:[%s1534_s11 + $0x8] sm:$0xff] }
  0x19   :  { %182 = vperm.xlu1 %1079, %v151_v7   ;;  %1021 = vmatprep.mubr.msk.f32.mxu0 %vm1131_vm0, %v1130_v1  ;;  %v444_v23 = vld [vmem:[%s1534_s11] sm:$0xff]  ;;  %v447_v24 = vld [vmem:[%s1534_s11 + $0x18] sm:$0xff]  ;;  %v446_v25 = vld [vmem:[%s1534_s11 + $0x10] sm:$0xff] }
  0x1a   :  { %172 = vperm.xlu0 %1078, %v149_v8   ;;  %v449_v26 = vld [vmem:[%s1534_s11 + $0x28] sm:$0xff]  ;;  %v448_v27 = vld [vmem:[%s1534_s11 + $0x20] sm:$0xff]  ;;  %v451_v28 = vld [vmem:[%s1534_s11 + $0x38] sm:$0xff] }
  0x1b   :  { %v450_v29 = vld [vmem:[%s1534_s11 + $0x30] sm:$0xff]  ;;  %v453_v30 = vld [vmem:[%s1534_s11 + $0x48] sm:$0xff]  ;;  %v452_v31 = vld [vmem:[%s1534_s11 + $0x40] sm:$0xff] }
  0x1c   :  { %v455_v32 = vld [vmem:[%s1534_s11 + $0x58] sm:$0xff]  ;;  %v454_v33 = vld [vmem:[%s1534_s11 + $0x50] sm:$0xff]  ;;  %v457_v34 = vld [vmem:[%s1534_s11 + $0x68] sm:$0xff] }
  0x1d   :  { %192 = vperm.xlu1 %1079, %v153_v9   ;;  %v456_v35 = vld [vmem:[%s1534_s11 + $0x60] sm:$0xff]  ;;  %v459_v36 = vld [vmem:[%s1534_s11 + $0x78] sm:$0xff]  ;;  %v458_v37 = vld [vmem:[%s1534_s11 + $0x70] sm:$0xff] }
  0x1e   :  { %187 = vperm.xlu0 %1078, %v152_v10   ;;  %v1335_v41 = vld [vmem:[%s1529_s6] sm:$0x1]  ;;  %v892_v44 = vld [vmem:[%s1527_s4 + $0x8] sm:$0xff]   ;;  %v893_v56 = vld [vmem:[%s1527_s4 + $0x10] sm:$0xff]  }
  0x1f   :  { %v790_v42 = vld [vmem:[%s1527_s4] sm:$0xff]   ;;  %v1342_v43 = vrot.slane %v1335_v41, %v1330_v40  ;;  %v795_v46 = vunpack.c.l.bf16 %v892_v44  ;;  %v885_v50 = vld [vmem:[%s1526_s3 + $0x8] sm:$0xff]   ;;  %v796_v54 = vunpack.c.h.bf16 %v892_v44  ;;  %v886_v1 = vld [vmem:[%s1526_s3 + $0x10] sm:$0xff]   ;;  %v800_v3 = vunpack.c.h.bf16 %v893_v56 }
  0x20   :  { %v791_v45 = vunpack.c.l.bf16 %v790_v42  ;;  %v758_v49 = vld [vmem:[%s1526_s3] sm:$0xff]   ;;  %v792_v55 = vunpack.c.h.bf16 %v790_v42  ;;  %v763_v58 = vunpack.c.l.bf16 %v885_v50  ;;  %v764_v62 = vunpack.c.h.bf16 %v885_v50  ;;  %v894_v7 = vld [vmem:[%s1527_s4 + $0x18] sm:$0xff]  }
  0x21   :  { %202 = vperm.xlu1 %1079, %v155_v11   ;;  %v759_v57 = vunpack.c.l.bf16 %v758_v49  ;;  %v760_v2 = vunpack.c.h.bf16 %v758_v49  ;;  %v799_v6 = vunpack.c.l.bf16 %v893_v56  ;;  %v768_v10 = vunpack.c.h.bf16 %v886_v1 }
  0x22   :  { %197 = vperm.xlu0 %1078, %v154_v12   ;;  %v767_v12 = vunpack.c.l.bf16 %v886_v1 }
  0x25   :  { %212 = vperm.xlu1 %1079, %v157_v13  }
  0x26   :  { %207 = vperm.xlu0 %1078, %v156_v14  }
  0x29   :  { %222 = vperm.xlu1 %1079, %v159_v15  }
  0x2a   :  { %217 = vperm.xlu0 %1078, %v158_v16  }
  0x2d   :  { %232 = vperm.xlu1 %1079, %v161_v17   ;;  %v887_v17 = vld [vmem:[%s1526_s3 + $0x18] sm:$0xff]  }
  0x2e   :  { %227 = vperm.xlu0 %1078, %v160_v18  }
  0x31   :  { %242 = vperm.xlu1 %1079, %v163_v19   ;;  %v804_v19 = vunpack.c.h.bf16 %v894_v7 }
  0x32   :  { %237 = vperm.xlu0 %1078, %v162_v20  }
  0x35   :  { %468 = vperm.xlu1 %1079, %v445_v22  }
  0x36   :  { %463 = vperm.xlu0 %1078, %v444_v23   ;;  %v803_v23 = vunpack.c.l.bf16 %v894_v7 }
  0x39   :  { %478 = vperm.xlu1 %1079, %v447_v24  }
  0x3a   :  { %473 = vperm.xlu0 %1078, %v446_v25   ;;  %v772_v25 = vunpack.c.h.bf16 %v887_v17 }
  0x3d   :  { %488 = vperm.xlu1 %1079, %v449_v26  }
  0x3e   :  { %483 = vperm.xlu0 %1078, %v448_v27   ;;  %v771_v27 = vunpack.c.l.bf16 %v887_v17 }
  0x41   :  { %498 = vperm.xlu1 %1079, %v451_v28  }
  0x42   :  { %493 = vperm.xlu0 %1078, %v450_v29   ;;  %v895_v29 = vld [vmem:[%s1527_s4 + $0x20] sm:$0xff]  }
  0x43   :  { %v808_v38 = vunpack.c.h.bf16 %v895_v29  ;;  %v807_v39 = vunpack.c.l.bf16 %v895_v29  ;;  %v854_v29 = vld [vmem:[%s1533_s10] sm:$0xff]  }
  0x45   :  { %508 = vperm.xlu1 %1079, %v453_v30  }
  0x46   :  { %503 = vperm.xlu0 %1078, %v452_v31  }
  0x49   :  { %518 = vperm.xlu1 %1079, %v455_v32  }
  0x4a   :  { %513 = vperm.xlu0 %1078, %v454_v33  }
  0x4d   :  { %528 = vperm.xlu1 %1079, %v457_v34  }
  0x4e   :  { %523 = vperm.xlu0 %1078, %v456_v35   ;;  %v888_v35 = vld [vmem:[%s1526_s3 + $0x20] sm:$0xff]  }
  0x4f   :  { %v776_v42 = vunpack.c.h.bf16 %v888_v35 }
  0x51   :  { %538 = vperm.xlu1 %1079, %v459_v36  }
  0x52   :  { %533 = vperm.xlu0 %1078, %v458_v37  }
  0x94   :  { %v178_v47 = vpop.permute.xlu1 %177 }
  0x95   :  { %v168_v48 = vpop.permute.xlu0 %167  ;;  %v253_v51 = vmul.f32 %v1342_v43, %v178_v47  ;;  %v896_v47 = vld [vmem:[%s1527_s4 + $0x28] sm:$0xff]  }
  0x96   :  { %v251_v52 = vmul.f32 %v1342_v43, %v168_v48  ;;  %v812_v56 = vunpack.c.h.bf16 %v896_v47 }
  0x97   :  { %v333_v59 = vmul.f32 %v795_v46, %v253_v51 }
  0x98   :  { %v331_v53 = vmul.f32 %v791_v45, %v251_v52  ;;  %v183_v60 = vpop.permute.xlu1 %182  ;;  %v775_v45 = vunpack.c.l.bf16 %v888_v35  ;;  %v822_v35 = vld [vmem:[%s1532_s9] sm:$0xff]  }
  0x99   :  { %v173_v61 = vpop.permute.xlu0 %172  ;;  %v254_v63 = vmul.f32 %v1342_v43, %v183_v60  ;;  %v349_v9 = vadd.f32 %v763_v58, %v333_v59 }
  0x9a   :  { %v252_v0 = vmul.f32 %v1342_v43, %v173_v61  ;;  %v347_v8 = vadd.f32 %v759_v57, %v331_v53  ;;  %v889_v53 = vld [vmem:[%s1526_s3 + $0x28] sm:$0xff]   ;;  %v811_v57 = vunpack.c.l.bf16 %v896_v47 }
  0x9b   :  { %v334_v4 = vmul.f32 %v796_v54, %v254_v63  ;;  %v780_v58 = vunpack.c.h.bf16 %v889_v53  ;;  %v779_v60 = vunpack.c.l.bf16 %v889_v53 }
  0x9c   :  { %v332_v5 = vmul.f32 %v792_v55, %v252_v0  ;;  %v193_v11 = vpop.permute.xlu1 %192 }
  0x9d   :  { %v188_v13 = vpop.permute.xlu0 %187  ;;  %v350_v14 = vadd.f32 %v764_v62, %v334_v4  ;;  %v256_v15 = vmul.f32 %v1342_v43, %v193_v11  ;;  %v897_v62 = vld [vmem:[%s1527_s4 + $0x30] sm:$0xff]  }
  0x9e   :  { %v255_v16 = vmul.f32 %v1342_v43, %v188_v13  ;;  %v348_v18 = vadd.f32 %v760_v2, %v332_v5  ;;  %v890_v4 = vld [vmem:[%s1526_s3 + $0x30] sm:$0xff]   ;;  %v816_v7 = vunpack.c.h.bf16 %v897_v62  ;;  %v898_v13 = vld [vmem:[%s1527_s4 + $0x38] sm:$0xff]  }
  0x9f   :  { %v336_v20 = vmul.f32 %v800_v3, %v256_v15  ;;  %v1028_v30 = vpack.c.bf16 %v350_v14, %v349_v9  ;;  %v784_v9 = vunpack.c.h.bf16 %v890_v4  ;;  %v783_v11 = vunpack.c.l.bf16 %v890_v4  ;;  %v900_v4 = vld [vmem:[%s1532_s9 + $0x10] sm:$0xff]  }
  0xa0   :  { %v335_v22 = vmul.f32 %v799_v6, %v255_v16  ;;  %v1025_v24 = vpack.c.bf16 %v348_v18, %v347_v8  ;;  %v203_v26 = vpop.permute.xlu1 %202  ;;  %v815_v8 = vunpack.c.l.bf16 %v897_v62 }
  0xa1   :  { %v198_v28 = vpop.permute.xlu0 %197  ;;  %v352_v31 = vadd.f32 %v768_v10, %v336_v20  ;;  %v258_v33 = vmul.f32 %v1342_v43, %v203_v26 }
  0xa2   :  { %v351_v32 = vadd.f32 %v767_v12, %v335_v22  ;;  %v257_v34 = vmul.f32 %v1342_v43, %v198_v28  ;;  %1026 = vmatpush3.bf16.msra.mxu1 %v1025_v24  ;;  %v820_v24 = vunpack.c.h.bf16 %v898_v13 }
  0xa3   :  { %1027 = vmatprep.subr.bf16.mxu1 %v1132_v21  ;;  %v338_v36 = vmul.f32 %v804_v19, %v258_v33  ;;  %v1406_v19 = vld [vmem:[%s1535_s12] sm:$0x1] }
  0xa4   :  { %v337_v37 = vmul.f32 %v803_v23, %v257_v34  ;;  %v213_v44 = vpop.permute.xlu1 %212  ;;  %v1031_v48 = vpack.c.bf16 %v352_v31, %v351_v32  ;;  %v891_v23 = vld [vmem:[%s1526_s3 + $0x38] sm:$0xff]   ;;  %v1414_v28 = vrot.slane %v1406_v19, %v1330_v40 }
  0xa5   :  { %v208_v46 = vpop.permute.xlu0 %207  ;;  %v354_v49 = vadd.f32 %v772_v25, %v338_v36  ;;  %v260_v51 = vmul.f32 %v1342_v43, %v213_v44  ;;  %v819_v25 = vunpack.c.l.bf16 %v898_v13  ;;  %v788_v36 = vunpack.c.h.bf16 %v891_v23 }
  0xa6   :  { %v353_v50 = vadd.f32 %v771_v27, %v337_v37  ;;  %v259_v52 = vmul.f32 %v1342_v43, %v208_v46  ;;  %1029 = vmatpush3.bf16.msra.mxu1 %v1028_v30  ;;  %v787_v37 = vunpack.c.l.bf16 %v891_v23  ;;  %v855_v44 = vunpack.c.l.bf16 %v854_v29 }
  0xa7   :  { %1030 = vmatprep.subr.bf16.mxu1 %v1132_v21  ;;  %v340_v54 = vmul.f32 %v808_v38, %v260_v51  ;;  %v899_v51 = vld [vmem:[%s1532_s9 + $0x8] sm:$0xff]  }
  0xa8   :  { %v339_v55 = vmul.f32 %v807_v39, %v259_v52  ;;  %v223_v59 = vpop.permute.xlu1 %222  ;;  %v1034_v63 = vpack.c.bf16 %v354_v49, %v353_v50  ;;  %v823_v49 = vunpack.c.l.bf16 %v822_v35  ;;  %v827_v62 = vunpack.c.l.bf16 %v899_v51 }
  0xa9   :  { %v218_v61 = vpop.permute.xlu0 %217  ;;  %v356_v0 = vadd.f32 %v776_v42, %v340_v54  ;;  %v262_v2 = vmul.f32 %v1342_v43, %v223_v59  ;;  %v856_v42 = vunpack.c.h.bf16 %v854_v29  ;;  %v907_v59 = vld [vmem:[%s1533_s10 + $0x10] sm:$0xff]   ;;  %v909_v29 = vld [vmem:[%s1533_s10 + $0x20] sm:$0xff]  }
  0xaa   :  { %v355_v1 = vadd.f32 %v775_v45, %v339_v55  ;;  %v261_v3 = vmul.f32 %v1342_v43, %v218_v61  ;;  %1032 = vmatpush3.bf16.msra.mxu1 %v1031_v48  ;;  %v824_v45 = vunpack.c.h.bf16 %v822_v35 }
  0xab   :  { %1033 = vmatprep.subr.bf16.mxu1 %v1132_v21  ;;  %v342_v5 = vmul.f32 %v812_v56, %v262_v2 }
  0xac   :  { %v341_v6 = vmul.f32 %v811_v57, %v261_v3  ;;  %v233_v10 = vpop.permute.xlu1 %232  ;;  %v1037_v14 = vpack.c.bf16 %v356_v0, %v355_v1 }
  0xad   :  { %v228_v12 = vpop.permute.xlu0 %227  ;;  %v358_v15 = vadd.f32 %v780_v58, %v342_v5  ;;  %v264_v17 = vmul.f32 %v1342_v43, %v233_v10  ;;  %v864_v5 = vunpack.c.h.bf16 %v907_v59  ;;  %v863_v10 = vunpack.c.l.bf16 %v907_v59 }
  0xae   :  { %v357_v16 = vadd.f32 %v779_v60, %v341_v6  ;;  %v263_v18 = vmul.f32 %v1342_v43, %v228_v12  ;;  %1035 = vmatpush3.bf16.msra.mxu1 %v1034_v63  ;;  %v828_v60 = vunpack.c.h.bf16 %v899_v51  ;;  %v832_v12 = vunpack.c.h.bf16 %v900_v4 }
  0xaf   :  { %1036 = vmatprep.subr.bf16.mxu1 %v1132_v21  ;;  %v344_v20 = vmul.f32 %v816_v7, %v264_v17 }
  0xb0   :  { %v343_v22 = vmul.f32 %v815_v8, %v263_v18  ;;  %v243_v26 = vpop.permute.xlu1 %242  ;;  %v1040_v30 = vpack.c.bf16 %v358_v15, %v357_v16 }
  0xb1   :  { %v238_v27 = vpop.permute.xlu0 %237  ;;  %v360_v31 = vadd.f32 %v784_v9, %v344_v20  ;;  %v266_v33 = vmul.f32 %v1342_v43, %v243_v26 }
  0xb2   :  { %v359_v32 = vadd.f32 %v783_v11, %v343_v22  ;;  %v265_v34 = vmul.f32 %v1342_v43, %v238_v27  ;;  %1038 = vmatpush3.bf16.msra.mxu1 %v1037_v14  ;;  %v906_v43 = vld [vmem:[%s1533_s10 + $0x8] sm:$0xff]   ;;  %v908_v11 = vld [vmem:[%s1533_s10 + $0x18] sm:$0xff]   ;;  %v831_v14 = vunpack.c.l.bf16 %v900_v4 }
  0xb3   :  { %1039 = vmatprep.subr.bf16.mxu1 %v1132_v21  ;;  %v346_v38 = vmul.f32 %v820_v24, %v266_v33  ;;  %v860_v57 = vunpack.c.h.bf16 %v906_v43  ;;  %v859_v58 = vunpack.c.l.bf16 %v906_v43  ;;  %v901_v22 = vld [vmem:[%s1532_s9 + $0x18] sm:$0xff]   ;;  %v868_v23 = vunpack.c.h.bf16 %v908_v11 }
  0xb4   :  { %v345_v39 = vmul.f32 %v819_v25, %v265_v34  ;;  %v469_v46 = vpop.permute.xlu1 %468  ;;  %v1043_v52 = vpack.c.bf16 %v360_v31, %v359_v32  ;;  %v867_v27 = vunpack.c.l.bf16 %v908_v11  ;;  %v835_v32 = vunpack.c.l.bf16 %v901_v22 }
  0xb5   :  { %v464_v47 = vpop.permute.xlu0 %463  ;;  %v548_v48 = vmul.f32 %v1414_v28, %v469_v46  ;;  %v362_v53 = vadd.f32 %v788_v36, %v346_v38  ;;  %v902_v38 = vld [vmem:[%s1532_s9 + $0x20] sm:$0xff]   ;;  %v871_v46 = vunpack.c.l.bf16 %v909_v29 }
  0xb6   :  { %v547_v50 = vmul.f32 %v1414_v28, %v464_v47  ;;  %1041 = vmatpush3.bf16.msra.mxu1 %v1040_v30  ;;  %v361_v54 = vadd.f32 %v787_v37, %v345_v39  ;;  %v836_v30 = vunpack.c.h.bf16 %v901_v22  ;;  %v872_v39 = vunpack.c.h.bf16 %v909_v29  ;;  %v910_v47 = vld [vmem:[%s1533_s10 + $0x28] sm:$0xff]  }
  0xb7   :  { %1042 = vmatprep.subr.bf16.mxu1 %v1132_v21  ;;  %v628_v55 = vmul.f32 %v856_v42, %v548_v48  ;;  %v840_v43 = vunpack.c.h.bf16 %v902_v38 }
  0xb8   :  { %v627_v56 = vmul.f32 %v855_v44, %v547_v50  ;;  %v479_v61 = vpop.permute.xlu1 %478  ;;  %v1046_v6 = vpack.c.bf16 %v362_v53, %v361_v54 }
  0xb9   :  { %v474_v63 = vpop.permute.xlu0 %473  ;;  %v644_v0 = vadd.f32 %v824_v45, %v628_v55  ;;  %v550_v2 = vmul.f32 %v1414_v28, %v479_v61  ;;  %v903_v55 = vld [vmem:[%s1532_s9 + $0x28] sm:$0xff]   ;;  %v911_v61 = vld [vmem:[%s1533_s10 + $0x30] sm:$0xff]  }
  0xba   :  { %v643_v1 = vadd.f32 %v823_v49, %v627_v56  ;;  %v549_v3 = vmul.f32 %v1414_v28, %v474_v63  ;;  %1044 = vmatpush3.bf16.msra.mxu1 %v1043_v52  ;;  %v839_v49 = vunpack.c.l.bf16 %v902_v38  ;;  %v876_v56 = vunpack.c.h.bf16 %v910_v47 }
  0xbb   :  { %1045 = vmatprep.subr.bf16.mxu1 %v1132_v21  ;;  %v630_v8 = vmul.f32 %v860_v57, %v550_v2  ;;  %v879_v11 = vunpack.c.l.bf16 %v911_v61 }
  0xbc   :  { %v1049_v7 = vpack.c.bf16 %v644_v0, %v643_v1  ;;  %v629_v9 = vmul.f32 %v859_v58, %v549_v3  ;;  %v489_v13 = vpop.permute.xlu1 %488  ;;  %v843_v0 = vunpack.c.l.bf16 %v903_v55 }
  0xbd   :  { %v484_v15 = vpop.permute.xlu0 %483  ;;  %v646_v16 = vadd.f32 %v828_v60, %v630_v8  ;;  %v552_v18 = vmul.f32 %v1414_v28, %v489_v13  ;;  %v875_v60 = vunpack.c.l.bf16 %v910_v47  ;;  %v755_v47 = vld [vmem:[%s1525_s2] ss:$0 sm:$0xff] }
  0xbe   :  { %v645_v17 = vadd.f32 %v827_v62, %v629_v9  ;;  %v551_v20 = vmul.f32 %v1414_v28, %v484_v15  ;;  %1050 = vmatpush3.bf16.msra.mxu0 %v1049_v7  ;;  %1047 = vmatpush3.bf16.msra.mxu1 %v1046_v6  ;;  %v844_v62 = vunpack.c.h.bf16 %v903_v55  ;;  %v904_v6 = vld [vmem:[%s1532_s9 + $0x30] sm:$0xff]   ;;  %v880_v7 = vunpack.c.h.bf16 %v911_v61 }
  0xbf   :  { %1051 = vmatprep.subr.bf16.mxu0 %v1132_v21  ;;  %v632_v25 = vmul.f32 %v864_v5, %v552_v18  ;;  %v848_v13 = vunpack.c.h.bf16 %v904_v6  ;;  %v847_v15 = vunpack.c.l.bf16 %v904_v6 }
  0xc0   :  { %v1052_v24 = vpack.c.bf16 %v646_v16, %v645_v17  ;;  %v631_v26 = vmul.f32 %v863_v10, %v551_v20  ;;  %v499_v31 = vpop.permute.xlu1 %498 }
  0xc1   :  { %v494_v33 = vpop.permute.xlu0 %493  ;;  %v648_v34 = vadd.f32 %v832_v12, %v632_v25  ;;  %v554_v36 = vmul.f32 %v1414_v28, %v499_v31  ;;  %v912_v12 = vld [vmem:[%s1533_s10 + $0x38] sm:$0xff]  }
  0xc2   :  { %v647_v35 = vadd.f32 %v831_v14, %v631_v26  ;;  %v553_v37 = vmul.f32 %v1414_v28, %v494_v33  ;;  %1053 = vmatpush3.bf16.msra.mxu0 %v1052_v24  ;;  %v884_v24 = vunpack.c.h.bf16 %v912_v12  ;;  %v883_v29 = vunpack.c.l.bf16 %v912_v12 }
  0xc3   :  { %1054 = vmatprep.subr.bf16.mxu0 %v1132_v21  ;;  %v634_v44 = vmul.f32 %v868_v23, %v554_v36  ;;  %v905_v23 = vld [vmem:[%s1532_s9 + $0x38] sm:$0xff]  }
  0xc4   :  { %v1055_v42 = vpack.c.bf16 %v648_v34, %v647_v35  ;;  %v633_v45 = vmul.f32 %v867_v27, %v553_v37  ;;  %v509_v48 = vpop.permute.xlu1 %508 }
  0xc5   :  { %v504_v50 = vpop.permute.xlu0 %503  ;;  %v650_v51 = vadd.f32 %v836_v30, %v634_v44  ;;  %v556_v53 = vmul.f32 %v1414_v28, %v509_v48  ;;  %v852_v30 = vunpack.c.h.bf16 %v905_v23 }
  0xc6   :  { %v649_v52 = vadd.f32 %v835_v32, %v633_v45  ;;  %v555_v54 = vmul.f32 %v1414_v28, %v504_v50  ;;  %1056 = vmatpush3.bf16.msra.mxu0 %v1055_v42  ;;  %v851_v32 = vunpack.c.l.bf16 %v905_v23  ;;  %v364_v50 = vld [vmem:[%s1531_s8] sm:$0x1] }
  0xc7   :  { %1057 = vmatprep.subr.bf16.mxu0 %v1132_v21  ;;  %v636_v58 = vmul.f32 %v872_v39, %v556_v53 }
  0xc8   :  { %v1058_v57 = vpack.c.bf16 %v650_v51, %v649_v52  ;;  %v635_v59 = vmul.f32 %v871_v46, %v555_v54  ;;  %v519_v63 = vpop.permute.xlu1 %518  ;;  %v365_v51 = vmul.f32 %v364_v50, %v1335_v41  ;;  %v659_v41 = vld [vmem:[%s1536_s13] sm:$0x1] }
  0xc9   :  { %v514_v1 = vpop.permute.xlu0 %513  ;;  %v652_v2 = vadd.f32 %v840_v43, %v636_v58  ;;  %v558_v4 = vmul.f32 %v1414_v28, %v519_v63  ;;  %v660_v58 = vld [vmem:[%s1537_s14] sm:$0x1] }
  0xca   :  { %v651_v3 = vadd.f32 %v839_v49, %v635_v59  ;;  %v557_v5 = vmul.f32 %v1414_v28, %v514_v1  ;;  %1059 = vmatpush3.bf16.msra.mxu0 %v1058_v57  ;;  %v661_v59 = vmul.f32 %v660_v58, %v1406_v19 }
  0xcb   :  { %1060 = vmatprep.subr.bf16.mxu0 %v1132_v21  ;;  %v638_v9 = vmul.f32 %v876_v56, %v558_v4 }
  0xcc   :  { %v1061_v8 = vpack.c.bf16 %v652_v2, %v651_v3  ;;  %v637_v10 = vmul.f32 %v875_v60, %v557_v5  ;;  %v529_v14 = vpop.permute.xlu1 %528  ;;  %v662_v60 = vadd.f32 %v661_v59, %v659_v41 }
  0xcd   :  { %v524_v16 = vpop.permute.xlu0 %523  ;;  %v654_v17 = vadd.f32 %v844_v62, %v638_v9  ;;  %v560_v20 = vmul.f32 %v1414_v28, %v529_v14 }
  0xce   :  { %v653_v18 = vadd.f32 %v843_v0, %v637_v10  ;;  %v559_v22 = vmul.f32 %v1414_v28, %v524_v16  ;;  %1062 = vmatpush3.bf16.msra.mxu0 %v1061_v8  ;;  %v667_v61 = vrot.slane %v662_v60, %v1330_v40 }
  0xcf   :  { %1063 = vmatprep.subr.bf16.mxu0 %v1132_v21  ;;  %v640_v26 = vmul.f32 %v880_v7, %v560_v20 }
  0xd0   :  { %v1064_v25 = vpack.c.bf16 %v654_v17, %v653_v18  ;;  %v639_v27 = vmul.f32 %v879_v11, %v559_v22  ;;  %v539_v31 = vpop.permute.xlu1 %538 }
  0xd1   :  { %v534_v33 = vpop.permute.xlu0 %533  ;;  %v656_v34 = vadd.f32 %v848_v13, %v640_v26  ;;  %v562_v36 = vmul.f32 %v1414_v28, %v539_v31 }
  0xd2   :  { %v655_v35 = vadd.f32 %v847_v15, %v639_v27  ;;  %v561_v37 = vmul.f32 %v1414_v28, %v534_v33  ;;  %1065 = vmatpush3.bf16.msra.mxu0 %v1064_v25 }
  0xd3   :  { %1066 = vmatprep.subr.bf16.mxu0 %v1132_v21  ;;  %v642_v39 = vmul.f32 %v884_v24, %v562_v36 }
  0xd4   :  { %v1067_v38 = vpack.c.bf16 %v656_v34, %v655_v35  ;;  %v641_v42 = vmul.f32 %v883_v29, %v561_v37 }
  0xd5   :  { %v658_v44 = vadd.f32 %v852_v30, %v642_v39 }
  0xd6   :  { %v657_v45 = vadd.f32 %v851_v32, %v641_v42  ;;  %1068 = vmatpush3.bf16.msra.mxu0 %v1067_v38 }
  0xd7   :  { %1069 = vmatprep.subr.bf16.mxu0 %v1132_v21  ;;  %v363_v21 = vld [vmem:[%s1530_s7] sm:$0x1]  ;;  %s1133_s7 = smov [#allocation5]  }
  0xd8   :  { %v1070_v46 = vpack.c.bf16 %v658_v44, %v657_v45  ;;  %v366_v52 = vadd.f32 %v365_v51, %v363_v21  ;;  %s746_s6 = sshll.u32 %s1133_s7, 4  ;;  %s747_s6 = int_to_ptr.vmem [resolvable:$true] %s746_s6 }
  0xd9   :  { %s1102_s18 = scalar_lea.vmem %s747_s6, 128  ;;  %p1107_p9 = scmp.lt.s32.totalorder %s747_s6, %s747_s6 }
  0xda   :  { %1071 = vmatpush3.bf16.msra.mxu0 %v1070_v46  ;;  %v371_v53 = vrot.slane %v366_v52, %v1330_v40  ;;  %p1103_p8 = scmp.ne.s32.totalorder %s747_s6, %s1102_s18  ;;  %p1108_p10 = scmp.lt.s32.totalorder %s1102_s18, %s1102_s18 }
  0xdc   :  { %p1109_p11 = por %p1108_p10, %p1107_p9 }
  0xde   :  { %p1110_p12 = pnand %p1109_p11, %p1103_p8 }
  0xeb   :  { %v143_v43 = vpop.f32.mrb[0].mxu0 }
  0xec   :  { %v144_v48 = vadd.f32 %v755_v47, %v143_v43  ;;  %v953_v28 = vpop.f32.mrb[1].mxu0 }
  0xee   :  { %v147_v49 = vmax.f32 %v144_v48, 0.0 }
  0xf0   :  { %987 = vmatmul.mubr.f32.vlgmr.msra.gmra.mrb[0].mxu1 %v147_v49 }
 0x1c3   :  { %v439_v54 = vpop.f32.mrb[0].mxu1 }
 0x1c4   :  { %v440_v55 = vadd.f32 %v439_v54, %v371_v53  ;;  %v988_v56 = vpop.f32.mrb[1].mxu1 }
 0x1c6   :  { %v443_v57 = vmax.f32 %v440_v55, 0.0 }
 0x1c8   :  { %1022 = vmatmul.mubr.f32.vlgmr.msra.gmra.mrb[2].mxu0 %v443_v57 }
 0x29b   :  { %v735_v62 = vpop.f32.mrb[2].mxu0 }
 0x29c   :  { %v736_v63 = vadd.f32 %v735_v62, %v667_v61  ;;  %v1023_v0 = vpop.f32.mrb[3].mxu0 }
 0x29e   :  { %739 = vst [vmem:[#allocation5] sm:$0xff] %v736_v63 }
 0x29f   :  { %1113 = shalt.err (!%p1110_p12)
}
 0x2a0   :  { %s1114_s13 = scalar_lea.hbm %s1538_s15, 128 }
 0x2a1   :  { %p1115_p13 = scmp.ne.s32.totalorder %s1538_s15, %s1114_s13  ;;  %p1118_p0 = scmp.lt.u32.totalorder %s1114_s13, %s1538_s15 }
 0x2a3   :  { %p1120_p1 = pnand %p1118_p0, %p1115_p13 }
 0x2a5   :  { %1123 = shalt.err (!%p1120_p1)
}
 0x2a6   :  { %749 = dma.vmem_to_hbm [thread:$0]  %s747_s6, 128, %s1538_s15, [#allocation4]  }
 0x2a7   :  { %1126 = dma.done.wait [#allocation4], 128  }
 0x2a8   :  { %1127 = vsyncadd [#allocation4], 4294967168 }
 0x2a9   :  { %753 = vsyncpa [#allocation3], 1 }
 0x2aa   :  { %754 = vsyncpa [#allocation4], 1 }

</bundles_post_ra>
